<compile_context>
chip_gen: v7x
topology: tpu7x:2x2x1
jax: 0.10.0
libtpu: 0.0.40
codegen_flags: <defaults>
</compile_context>

<pallas_src>
import math
from functools import partial

import jax
import jax.numpy as jnp
from jax import lax
from jax.experimental import pallas as pl
from jax.experimental.pallas import tpu as pltpu

_MiB = 1024 * 1024


# ---------------------------------------------------------------------------
# VMEM / tiling helpers
# ---------------------------------------------------------------------------
def _vmem_config(vmem_limit_bytes=None):
    """Generation-aware (vmem_limit, tile_budget) pair."""
    if vmem_limit_bytes is None:
        try:
            info = pltpu.get_tpu_info()
            physical = int(getattr(info, "vmem_capacity_bytes", 0)) or 64 * _MiB
        except Exception:  # interpret mode / unknown backend
            physical = 64 * _MiB
        # 128 MiB chips (v5e/v6e) -> 64 MiB limit; 64 MiB chips (v7x) -> 48 MiB.
        vmem_limit_bytes = max(16 * _MiB, min(physical - 16 * _MiB, 64 * _MiB))
    tile_budget = int(vmem_limit_bytes * 0.55)
    return int(vmem_limit_bytes), tile_budget


def _sublane_granularity(*arrays):
    """Sublane rounding for TH: 8 for 32-bit, 16 for 16-bit, 32 for 8-bit."""
    g = 8
    for a in arrays:
        sz = jnp.dtype(a.dtype).itemsize
        if sz == 2:
            g = max(g, 16)
        elif sz == 1:
            g = max(g, 32)
    return g


def _pick_tile_h(H, bytes_per_row, granularity, budget_bytes):
    """Largest TH (multiple of `granularity`) whose double-buffered slab fits.

    TH need not divide H: the grid uses cdiv(H, TH) and the kernel masks the
    padded tail rows.  If the whole height fits, TH = H (block dim equal to
    the full array dim, so any H is legal).
    """
    if H <= granularity or 2 * H * bytes_per_row <= budget_bytes:
        return H
    max_fit_rows = budget_bytes // (2 * bytes_per_row)
    th = (max_fit_rows // granularity) * granularity
    th = max(granularity, th)
    return H if th >= H else int(th)


# ---------------------------------------------------------------------------
# Fused multi-task loss kernel
# ---------------------------------------------------------------------------
def _fused_kernel(c_inst, c_type, c_sem, log_edge_w, weights, H, TH,
                  inst_ref, t_inst_ref,
                  type_ref, t_type_ref,
                  aux_ref, t_aux_ref,
                  sem_ref, t_sem_ref,
                  w_ref, out_ref):
    iw, tw, aw, sw = weights
    t = pl.program_id(1)

    def per_pixel_ce(logits_ref, n_cls, tgt_ref):
        logits = logits_ref[0].astype(jnp.float32)                # (C, TH, W)
        tgt = tgt_ref[0]                                          # (TH, W) int
        # log-sum-exp over the (small, unrolled) channel axis
        m = logits[0]
        for c in range(1, n_cls):
            m = jnp.maximum(m, logits[c])
        s = jnp.zeros_like(m)
        picked = jnp.zeros_like(m)
        for c in range(n_cls):
            s = s + jnp.exp(logits[c] - m)
            picked = jnp.where(tgt == c, logits[c], picked)       # cmp+select
        return (jnp.log(s) + m) - picked                          # (TH, W)

    # Statically-weighted per-pixel contributions (all branches share the
    # same mean denominator B*H*W, so combining here is exact).  edge_w is
    # factored out of both edge-weighted CE terms (one multiply, not two).
    edge_term = iw * per_pixel_ce(inst_ref, c_inst, t_inst_ref) \
        + tw * per_pixel_ce(type_ref, c_type, t_type_ref)
    if log_edge_w is not None:   # static skip when edge_weight == 1.0
        # edge_weight ** target_weight == exp(log(edge_weight) * target_weight)
        edge_term = edge_term * jnp.exp(log_edge_w * w_ref[0].astype(jnp.float32))

    diff = aux_ref[0, 0].astype(jnp.float32) - t_aux_ref[0].astype(jnp.float32)
    total = edge_term + aw * (diff * diff) \
        + sw * per_pixel_ce(sem_ref, c_sem, t_sem_ref)

    if H % TH != 0:              # static: mask the padded rows of the tail tile
        row = lax.broadcasted_iota(jnp.int32, total.shape, 0)
        total = jnp.where(row < (H - t * TH), total, 0.0)

    # One distinct (1,1,1,1) partial per (batch, tile) grid point -> no RMW,
    # no init phase, both grid axes can be "parallel".
    out_ref[...] = jnp.sum(total)[None, None, None, None]


def multi_task_loss(yhat_inst, target_inst,
                    yhat_type, target_type,
                    yhat_aux, target_aux,
                    yhat_sem, target_sem,
                    target_weight, edge_weight=1.1,
                    loss_weights=(1.0, 1.0, 1.0, 1.0),
                    vmem_limit_bytes=None):
    """Fused forward pass of MultiTaskLoss. Returns a scalar f32 loss."""
    B, Ci, H, W = yhat_inst.shape
    Ct = yhat_type.shape[1]
    Cs = yhat_sem.shape[1]
    assert yhat_aux.shape[1] == 1
    assert target_inst.shape == (B, H, W)
    assert edge_weight > 0.0, "edge_weight must be > 0 (it is exponentiated)"

    vmem_limit, tile_budget = _vmem_config(vmem_limit_bytes)

    # Bytes streamed per image row across all nine inputs (native dtypes).
    isz = lambda a: jnp.dtype(a.dtype).itemsize
    bytes_per_row = W * (
        Ci * isz(yhat_inst) + Ct * isz(yhat_type)
        + 1 * isz(yhat_aux) + Cs * isz(yhat_sem)
        + isz(target_inst) + isz(target_type)
        + isz(target_aux) + isz(target_sem) + isz(target_weight))
    gran = _sublane_granularity(yhat_inst, yhat_type, yhat_aux, yhat_sem,
                                target_inst, target_type, target_aux,
                                target_sem, target_weight)
    TH = _pick_tile_h(H, bytes_per_row, gran, tile_budget)
    n_th = pl.cdiv(H, TH)

    log_edge_w = None if float(edge_weight) == 1.0 else float(math.log(edge_weight))
    kernel = partial(_fused_kernel, Ci, Ct, Cs, log_edge_w,
                     tuple(float(w) for w in loss_weights), H, TH)

    def logits_spec(C):
        return pl.BlockSpec((1, C, TH, W), lambda b, t: (b, 0, t, 0))

    def map_spec():
        return pl.BlockSpec((1, TH, W), lambda b, t: (b, t, 0))

    partials = pl.pallas_call(
        kernel,
        out_shape=jax.ShapeDtypeStruct((B, n_th, 1, 1), jnp.float32),
        grid_spec=pltpu.PrefetchScalarGridSpec(
            num_scalar_prefetch=0,
            grid=(B, n_th),
            in_specs=[logits_spec(Ci), map_spec(),
                      logits_spec(Ct), map_spec(),
                      logits_spec(1), map_spec(),
                      logits_spec(Cs), map_spec(),
                      map_spec()],
            out_specs=pl.BlockSpec((1, 1, 1, 1), lambda b, t: (b, t, 0, 0)),
        ),
        compiler_params=pltpu.CompilerParams(
            dimension_semantics=("parallel", "parallel"),
            vmem_limit_bytes=vmem_limit),
    )(yhat_inst, target_inst,
      yhat_type, target_type,
      yhat_aux, target_aux,
      yhat_sem, target_sem,
      target_weight)

    return jnp.sum(partials) / float(B * H * W)


# ---------------------------------------------------------------------------
# Pure-JAX reference (for correctness check)
# ---------------------------------------------------------------------------
def _ref_ce(logits, target, wmap=None, edge_weight=1.1):
    lse = jax.nn.logsumexp(logits.astype(jnp.float32), axis=1)
    picked = jnp.take_along_axis(logits.astype(jnp.float32),
                                 target[:, None].astype(jnp.int32), axis=1)[:, 0]
    ce = lse - picked
    if wmap is not None:
        ce = ce * (edge_weight ** wmap.astype(jnp.float32))
    return jnp.mean(ce)


def _ref_multi_task(yhat_inst, target_inst, yhat_type, target_type,
                    yhat_aux, target_aux, yhat_sem, target_sem,
                    target_weight, edge_weight, loss_weights):
    iw, tw, aw, sw = loss_weights
    l = iw * _ref_ce(yhat_inst, target_inst, target_weight, edge_weight)
    l += tw * _ref_ce(yhat_type, target_type, target_weight, edge_weight)
    l += aw * jnp.mean((yhat_aux[:, 0].astype(jnp.float32)
                        - target_aux.astype(jnp.float32)) ** 2)
    l += sw * _ref_ce(yhat_sem, target_sem)
    return l


if __name__ == "__main__":
    key = jax.random.PRNGKey(0)
    B, H, W = 2, 16, 16
    C_inst, C_type, C_sem = 2, 4, 3
    edge_weight = 1.1
    loss_weights = (1.0, 0.8, 0.5, 0.7)

    ks = jax.random.split(key, 9)
    yhat_inst = jax.random.normal(ks[0], (B, C_inst, H, W), jnp.float32)
    target_inst = jax.random.randint(ks[1], (B, H, W), 0, C_inst, jnp.int32)
    yhat_type = jax.random.normal(ks[2], (B, C_type, H, W), jnp.float32)
    target_type = jax.random.randint(ks[3], (B, H, W), 0, C_type, jnp.int32)
    yhat_aux = jax.random.normal(ks[4], (B, 1, H, W), jnp.float32)
    target_aux = jax.random.normal(ks[5], (B, H, W), jnp.float32)
    yhat_sem = jax.random.normal(ks[6], (B, C_sem, H, W), jnp.float32)
    target_sem = jax.random.randint(ks[7], (B, H, W), 0, C_sem, jnp.int32)
    target_weight = (jax.random.uniform(ks[8], (B, H, W), jnp.float32) > 0.7
                     ).astype(jnp.float32)

    loss = multi_task_loss(yhat_inst, target_inst,
                           yhat_type, target_type,
                           yhat_aux, target_aux,
                           yhat_sem, target_sem,
                           target_weight, edge_weight, loss_weights)
    loss = jax.block_until_ready(loss)

    ref = _ref_multi_task(yhat_inst, target_inst, yhat_type, target_type,
                          yhat_aux, target_aux, yhat_sem, target_sem,
                          target_weight, edge_weight, loss_weights)
    assert jnp.allclose(loss, ref, rtol=1e-4, atol=1e-5), (loss, ref)

    print("KERNEL_OK")
</pallas_src>

<mosaic_0001>
module attributes {stable_mosaic.version = 11 : i64} {
  func.func @_fused_kernel(%arg0: i32, %arg1: i32, %arg2: memref<1x2x16x16xf32, #tpu.memory_space<vmem>>, %arg3: memref<1x16x16xi32, #tpu.memory_space<vmem>>, %arg4: memref<1x4x16x16xf32, #tpu.memory_space<vmem>>, %arg5: memref<1x16x16xi32, #tpu.memory_space<vmem>>, %arg6: memref<1x1x16x16xf32, #tpu.memory_space<vmem>>, %arg7: memref<1x16x16xf32, #tpu.memory_space<vmem>>, %arg8: memref<1x3x16x16xf32, #tpu.memory_space<vmem>>, %arg9: memref<1x16x16xi32, #tpu.memory_space<vmem>>, %arg10: memref<1x16x16xf32, #tpu.memory_space<vmem>>, %arg11: memref<1x1x1x1xf32, #tpu.memory_space<vmem>>) attributes {dimension_semantics = [#tpu.dimension_semantics<parallel>, #tpu.dimension_semantics<parallel>], iteration_bounds = array<i64: 2, 1>, scalar_prefetch = 0 : i64, scratch_operands = 0 : i64, tpu.core_type = #tpu.core_type<tc>, window_params = [{transform_indices = @transform_0, window_bounds = array<i64: 1, 2, 16, 16>}, {transform_indices = @transform_1, window_bounds = array<i64: 1, 16, 16>}, {transform_indices = @transform_2, window_bounds = array<i64: 1, 4, 16, 16>}, {transform_indices = @transform_3, window_bounds = array<i64: 1, 16, 16>}, {transform_indices = @transform_4, window_bounds = array<i64: 1, 1, 16, 16>}, {transform_indices = @transform_5, window_bounds = array<i64: 1, 16, 16>}, {transform_indices = @transform_6, window_bounds = array<i64: 1, 3, 16, 16>}, {transform_indices = @transform_7, window_bounds = array<i64: 1, 16, 16>}, {transform_indices = @transform_8, window_bounds = array<i64: 1, 16, 16>}, {transform_indices = @transform_9, window_bounds = array<i64: 1, 1, 1, 1>}]} {
    %c0 = arith.constant 0 : index
    %c0_0 = arith.constant 0 : index
    %c0_1 = arith.constant 0 : index
    %c0_2 = arith.constant 0 : index
    %0 = vector.load %arg2[%c0, %c0_0, %c0_1, %c0_2] : memref<1x2x16x16xf32, #tpu.memory_space<vmem>>, vector<1x2x16x16xf32>
    %1 = vector.shape_cast %0 : vector<1x2x16x16xf32> to vector<2x16x16xf32>
    %c0_3 = arith.constant 0 : index
    %c0_4 = arith.constant 0 : index
    %c0_5 = arith.constant 0 : index
    %2 = vector.load %arg3[%c0_3, %c0_4, %c0_5] : memref<1x16x16xi32, #tpu.memory_space<vmem>>, vector<1x16x16xi32>
    %3 = vector.shape_cast %2 : vector<1x16x16xi32> to vector<16x16xi32>
    %4 = vector.extract_strided_slice %1 {offsets = [0, 0, 0], sizes = [1, 16, 16], strides = [1, 1, 1]} : vector<2x16x16xf32> to vector<1x16x16xf32>
    %5 = vector.shape_cast %4 : vector<1x16x16xf32> to vector<16x16xf32>
    %6 = vector.extract_strided_slice %1 {offsets = [1, 0, 0], sizes = [1, 16, 16], strides = [1, 1, 1]} : vector<2x16x16xf32> to vector<1x16x16xf32>
    %7 = vector.shape_cast %6 : vector<1x16x16xf32> to vector<16x16xf32>
    %8 = arith.maximumf %5, %7 : vector<16x16xf32>
    %cst = arith.constant 0.000000e+00 : f32
    %9 = vector.broadcast %cst : f32 to vector<16x16xf32>
    %cst_6 = arith.constant 0.000000e+00 : f32
    %10 = vector.broadcast %cst_6 : f32 to vector<16x16xf32>
    %11 = vector.extract_strided_slice %1 {offsets = [0, 0, 0], sizes = [1, 16, 16], strides = [1, 1, 1]} : vector<2x16x16xf32> to vector<1x16x16xf32>
    %12 = vector.shape_cast %11 : vector<1x16x16xf32> to vector<16x16xf32>
    %13 = arith.subf %12, %8 : vector<16x16xf32>
    %14 = math.exp %13 : vector<16x16xf32>
    %15 = arith.addf %9, %14 : vector<16x16xf32>
    %c0_i32 = arith.constant 0 : i32
    %16 = vector.broadcast %c0_i32 : i32 to vector<16x16xi32>
    %17 = arith.cmpi eq, %3, %16 : vector<16x16xi32>
    %18 = vector.extract_strided_slice %1 {offsets = [0, 0, 0], sizes = [1, 16, 16], strides = [1, 1, 1]} : vector<2x16x16xf32> to vector<1x16x16xf32>
    %19 = vector.shape_cast %18 : vector<1x16x16xf32> to vector<16x16xf32>
    %20 = arith.select %17, %19, %10 : vector<16x16xi1>, vector<16x16xf32>
    %21 = vector.extract_strided_slice %1 {offsets = [1, 0, 0], sizes = [1, 16, 16], strides = [1, 1, 1]} : vector<2x16x16xf32> to vector<1x16x16xf32>
    %22 = vector.shape_cast %21 : vector<1x16x16xf32> to vector<16x16xf32>
    %23 = arith.subf %22, %8 : vector<16x16xf32>
    %24 = math.exp %23 : vector<16x16xf32>
    %25 = arith.addf %15, %24 : vector<16x16xf32>
    %c1_i32 = arith.constant 1 : i32
    %26 = vector.broadcast %c1_i32 : i32 to vector<16x16xi32>
    %27 = arith.cmpi eq, %3, %26 : vector<16x16xi32>
    %28 = vector.extract_strided_slice %1 {offsets = [1, 0, 0], sizes = [1, 16, 16], strides = [1, 1, 1]} : vector<2x16x16xf32> to vector<1x16x16xf32>
    %29 = vector.shape_cast %28 : vector<1x16x16xf32> to vector<16x16xf32>
    %30 = arith.select %27, %29, %20 : vector<16x16xi1>, vector<16x16xf32>
    %31 = math.log %25 : vector<16x16xf32>
    %32 = arith.addf %31, %8 : vector<16x16xf32>
    %33 = arith.subf %32, %30 : vector<16x16xf32>
    %cst_7 = arith.constant 1.000000e+00 : f32
    %34 = vector.broadcast %cst_7 : f32 to vector<16x16xf32>
    %35 = arith.mulf %34, %33 : vector<16x16xf32>
    %c0_8 = arith.constant 0 : index
    %c0_9 = arith.constant 0 : index
    %c0_10 = arith.constant 0 : index
    %c0_11 = arith.constant 0 : index
    %36 = vector.load %arg4[%c0_8, %c0_9, %c0_10, %c0_11] : memref<1x4x16x16xf32, #tpu.memory_space<vmem>>, vector<1x4x16x16xf32>
    %37 = vector.shape_cast %36 : vector<1x4x16x16xf32> to vector<4x16x16xf32>
    %c0_12 = arith.constant 0 : index
    %c0_13 = arith.constant 0 : index
    %c0_14 = arith.constant 0 : index
    %38 = vector.load %arg5[%c0_12, %c0_13, %c0_14] : memref<1x16x16xi32, #tpu.memory_space<vmem>>, vector<1x16x16xi32>
    %39 = vector.shape_cast %38 : vector<1x16x16xi32> to vector<16x16xi32>
    %40 = vector.extract_strided_slice %37 {offsets = [0, 0, 0], sizes = [1, 16, 16], strides = [1, 1, 1]} : vector<4x16x16xf32> to vector<1x16x16xf32>
    %41 = vector.shape_cast %40 : vector<1x16x16xf32> to vector<16x16xf32>
    %42 = vector.extract_strided_slice %37 {offsets = [1, 0, 0], sizes = [1, 16, 16], strides = [1, 1, 1]} : vector<4x16x16xf32> to vector<1x16x16xf32>
    %43 = vector.shape_cast %42 : vector<1x16x16xf32> to vector<16x16xf32>
    %44 = arith.maximumf %41, %43 : vector<16x16xf32>
    %45 = vector.extract_strided_slice %37 {offsets = [2, 0, 0], sizes = [1, 16, 16], strides = [1, 1, 1]} : vector<4x16x16xf32> to vector<1x16x16xf32>
    %46 = vector.shape_cast %45 : vector<1x16x16xf32> to vector<16x16xf32>
    %47 = arith.maximumf %44, %46 : vector<16x16xf32>
    %48 = vector.extract_strided_slice %37 {offsets = [3, 0, 0], sizes = [1, 16, 16], strides = [1, 1, 1]} : vector<4x16x16xf32> to vector<1x16x16xf32>
    %49 = vector.shape_cast %48 : vector<1x16x16xf32> to vector<16x16xf32>
    %50 = arith.maximumf %47, %49 : vector<16x16xf32>
    %cst_15 = arith.constant 0.000000e+00 : f32
    %51 = vector.broadcast %cst_15 : f32 to vector<16x16xf32>
    %cst_16 = arith.constant 0.000000e+00 : f32
    %52 = vector.broadcast %cst_16 : f32 to vector<16x16xf32>
    %53 = vector.extract_strided_slice %37 {offsets = [0, 0, 0], sizes = [1, 16, 16], strides = [1, 1, 1]} : vector<4x16x16xf32> to vector<1x16x16xf32>
    %54 = vector.shape_cast %53 : vector<1x16x16xf32> to vector<16x16xf32>
    %55 = arith.subf %54, %50 : vector<16x16xf32>
    %56 = math.exp %55 : vector<16x16xf32>
    %57 = arith.addf %51, %56 : vector<16x16xf32>
    %c0_i32_17 = arith.constant 0 : i32
    %58 = vector.broadcast %c0_i32_17 : i32 to vector<16x16xi32>
    %59 = arith.cmpi eq, %39, %58 : vector<16x16xi32>
    %60 = vector.extract_strided_slice %37 {offsets = [0, 0, 0], sizes = [1, 16, 16], strides = [1, 1, 1]} : vector<4x16x16xf32> to vector<1x16x16xf32>
    %61 = vector.shape_cast %60 : vector<1x16x16xf32> to vector<16x16xf32>
    %62 = arith.select %59, %61, %52 : vector<16x16xi1>, vector<16x16xf32>
    %63 = vector.extract_strided_slice %37 {offsets = [1, 0, 0], sizes = [1, 16, 16], strides = [1, 1, 1]} : vector<4x16x16xf32> to vector<1x16x16xf32>
    %64 = vector.shape_cast %63 : vector<1x16x16xf32> to vector<16x16xf32>
    %65 = arith.subf %64, %50 : vector<16x16xf32>
    %66 = math.exp %65 : vector<16x16xf32>
    %67 = arith.addf %57, %66 : vector<16x16xf32>
    %c1_i32_18 = arith.constant 1 : i32
    %68 = vector.broadcast %c1_i32_18 : i32 to vector<16x16xi32>
    %69 = arith.cmpi eq, %39, %68 : vector<16x16xi32>
    %70 = vector.extract_strided_slice %37 {offsets = [1, 0, 0], sizes = [1, 16, 16], strides = [1, 1, 1]} : vector<4x16x16xf32> to vector<1x16x16xf32>
    %71 = vector.shape_cast %70 : vector<1x16x16xf32> to vector<16x16xf32>
    %72 = arith.select %69, %71, %62 : vector<16x16xi1>, vector<16x16xf32>
    %73 = vector.extract_strided_slice %37 {offsets = [2, 0, 0], sizes = [1, 16, 16], strides = [1, 1, 1]} : vector<4x16x16xf32> to vector<1x16x16xf32>
    %74 = vector.shape_cast %73 : vector<1x16x16xf32> to vector<16x16xf32>
    %75 = arith.subf %74, %50 : vector<16x16xf32>
    %76 = math.exp %75 : vector<16x16xf32>
    %77 = arith.addf %67, %76 : vector<16x16xf32>
    %c2_i32 = arith.constant 2 : i32
    %78 = vector.broadcast %c2_i32 : i32 to vector<16x16xi32>
    %79 = arith.cmpi eq, %39, %78 : vector<16x16xi32>
    %80 = vector.extract_strided_slice %37 {offsets = [2, 0, 0], sizes = [1, 16, 16], strides = [1, 1, 1]} : vector<4x16x16xf32> to vector<1x16x16xf32>
    %81 = vector.shape_cast %80 : vector<1x16x16xf32> to vector<16x16xf32>
    %82 = arith.select %79, %81, %72 : vector<16x16xi1>, vector<16x16xf32>
    %83 = vector.extract_strided_slice %37 {offsets = [3, 0, 0], sizes = [1, 16, 16], strides = [1, 1, 1]} : vector<4x16x16xf32> to vector<1x16x16xf32>
    %84 = vector.shape_cast %83 : vector<1x16x16xf32> to vector<16x16xf32>
    %85 = arith.subf %84, %50 : vector<16x16xf32>
    %86 = math.exp %85 : vector<16x16xf32>
    %87 = arith.addf %77, %86 : vector<16x16xf32>
    %c3_i32 = arith.constant 3 : i32
    %88 = vector.broadcast %c3_i32 : i32 to vector<16x16xi32>
    %89 = arith.cmpi eq, %39, %88 : vector<16x16xi32>
    %90 = vector.extract_strided_slice %37 {offsets = [3, 0, 0], sizes = [1, 16, 16], strides = [1, 1, 1]} : vector<4x16x16xf32> to vector<1x16x16xf32>
    %91 = vector.shape_cast %90 : vector<1x16x16xf32> to vector<16x16xf32>
    %92 = arith.select %89, %91, %82 : vector<16x16xi1>, vector<16x16xf32>
    %93 = math.log %87 : vector<16x16xf32>
    %94 = arith.addf %93, %50 : vector<16x16xf32>
    %95 = arith.subf %94, %92 : vector<16x16xf32>
    %cst_19 = arith.constant 8.000000e-01 : f32
    %96 = vector.broadcast %cst_19 : f32 to vector<16x16xf32>
    %97 = arith.mulf %96, %95 : vector<16x16xf32>
    %98 = arith.addf %35, %97 : vector<16x16xf32>
    %c0_20 = arith.constant 0 : index
    %c0_21 = arith.constant 0 : index
    %c0_22 = arith.constant 0 : index
    %99 = vector.load %arg10[%c0_20, %c0_21, %c0_22] : memref<1x16x16xf32, #tpu.memory_space<vmem>>, vector<1x16x16xf32>
    %100 = vector.shape_cast %99 : vector<1x16x16xf32> to vector<16x16xf32>
    %cst_23 = arith.constant 0.0953101813 : f32
    %101 = vector.broadcast %cst_23 : f32 to vector<16x16xf32>
    %102 = arith.mulf %101, %100 : vector<16x16xf32>
    %103 = math.exp %102 : vector<16x16xf32>
    %104 = arith.mulf %98, %103 : vector<16x16xf32>
    %c0_24 = arith.constant 0 : index
    %c0_25 = arith.constant 0 : index
    %c0_26 = arith.constant 0 : index
    %c0_27 = arith.constant 0 : index
    %105 = vector.load %arg6[%c0_24, %c0_25, %c0_26, %c0_27] : memref<1x1x16x16xf32, #tpu.memory_space<vmem>>, vector<1x1x16x16xf32>
    %106 = vector.shape_cast %105 : vector<1x1x16x16xf32> to vector<16x16xf32>
    %c0_28 = arith.constant 0 : index
    %c0_29 = arith.constant 0 : index
    %c0_30 = arith.constant 0 : index
    %107 = vector.load %arg7[%c0_28, %c0_29, %c0_30] : memref<1x16x16xf32, #tpu.memory_space<vmem>>, vector<1x16x16xf32>
    %108 = vector.shape_cast %107 : vector<1x16x16xf32> to vector<16x16xf32>
    %109 = arith.subf %106, %108 : vector<16x16xf32>
    %110 = arith.mulf %109, %109 : vector<16x16xf32>
    %cst_31 = arith.constant 5.000000e-01 : f32
    %111 = vector.broadcast %cst_31 : f32 to vector<16x16xf32>
    %112 = arith.mulf %111, %110 : vector<16x16xf32>
    %113 = arith.addf %104, %112 : vector<16x16xf32>
    %c0_32 = arith.constant 0 : index
    %c0_33 = arith.constant 0 : index
    %c0_34 = arith.constant 0 : index
    %c0_35 = arith.constant 0 : index
    %114 = vector.load %arg8[%c0_32, %c0_33, %c0_34, %c0_35] : memref<1x3x16x16xf32, #tpu.memory_space<vmem>>, vector<1x3x16x16xf32>
    %115 = vector.shape_cast %114 : vector<1x3x16x16xf32> to vector<3x16x16xf32>
    %c0_36 = arith.constant 0 : index
    %c0_37 = arith.constant 0 : index
    %c0_38 = arith.constant 0 : index
    %116 = vector.load %arg9[%c0_36, %c0_37, %c0_38] : memref<1x16x16xi32, #tpu.memory_space<vmem>>, vector<1x16x16xi32>
    %117 = vector.shape_cast %116 : vector<1x16x16xi32> to vector<16x16xi32>
    %118 = vector.extract_strided_slice %115 {offsets = [0, 0, 0], sizes = [1, 16, 16], strides = [1, 1, 1]} : vector<3x16x16xf32> to vector<1x16x16xf32>
    %119 = vector.shape_cast %118 : vector<1x16x16xf32> to vector<16x16xf32>
    %120 = vector.extract_strided_slice %115 {offsets = [1, 0, 0], sizes = [1, 16, 16], strides = [1, 1, 1]} : vector<3x16x16xf32> to vector<1x16x16xf32>
    %121 = vector.shape_cast %120 : vector<1x16x16xf32> to vector<16x16xf32>
    %122 = arith.maximumf %119, %121 : vector<16x16xf32>
    %123 = vector.extract_strided_slice %115 {offsets = [2, 0, 0], sizes = [1, 16, 16], strides = [1, 1, 1]} : vector<3x16x16xf32> to vector<1x16x16xf32>
    %124 = vector.shape_cast %123 : vector<1x16x16xf32> to vector<16x16xf32>
    %125 = arith.maximumf %122, %124 : vector<16x16xf32>
    %cst_39 = arith.constant 0.000000e+00 : f32
    %126 = vector.broadcast %cst_39 : f32 to vector<16x16xf32>
    %cst_40 = arith.constant 0.000000e+00 : f32
    %127 = vector.broadcast %cst_40 : f32 to vector<16x16xf32>
    %128 = vector.extract_strided_slice %115 {offsets = [0, 0, 0], sizes = [1, 16, 16], strides = [1, 1, 1]} : vector<3x16x16xf32> to vector<1x16x16xf32>
    %129 = vector.shape_cast %128 : vector<1x16x16xf32> to vector<16x16xf32>
    %130 = arith.subf %129, %125 : vector<16x16xf32>
    %131 = math.exp %130 : vector<16x16xf32>
    %132 = arith.addf %126, %131 : vector<16x16xf32>
    %c0_i32_41 = arith.constant 0 : i32
    %133 = vector.broadcast %c0_i32_41 : i32 to vector<16x16xi32>
    %134 = arith.cmpi eq, %117, %133 : vector<16x16xi32>
    %135 = vector.extract_strided_slice %115 {offsets = [0, 0, 0], sizes = [1, 16, 16], strides = [1, 1, 1]} : vector<3x16x16xf32> to vector<1x16x16xf32>
    %136 = vector.shape_cast %135 : vector<1x16x16xf32> to vector<16x16xf32>
    %137 = arith.select %134, %136, %127 : vector<16x16xi1>, vector<16x16xf32>
    %138 = vector.extract_strided_slice %115 {offsets = [1, 0, 0], sizes = [1, 16, 16], strides = [1, 1, 1]} : vector<3x16x16xf32> to vector<1x16x16xf32>
    %139 = vector.shape_cast %138 : vector<1x16x16xf32> to vector<16x16xf32>
    %140 = arith.subf %139, %125 : vector<16x16xf32>
    %141 = math.exp %140 : vector<16x16xf32>
    %142 = arith.addf %132, %141 : vector<16x16xf32>
    %c1_i32_42 = arith.constant 1 : i32
    %143 = vector.broadcast %c1_i32_42 : i32 to vector<16x16xi32>
    %144 = arith.cmpi eq, %117, %143 : vector<16x16xi32>
    %145 = vector.extract_strided_slice %115 {offsets = [1, 0, 0], sizes = [1, 16, 16], strides = [1, 1, 1]} : vector<3x16x16xf32> to vector<1x16x16xf32>
    %146 = vector.shape_cast %145 : vector<1x16x16xf32> to vector<16x16xf32>
    %147 = arith.select %144, %146, %137 : vector<16x16xi1>, vector<16x16xf32>
    %148 = vector.extract_strided_slice %115 {offsets = [2, 0, 0], sizes = [1, 16, 16], strides = [1, 1, 1]} : vector<3x16x16xf32> to vector<1x16x16xf32>
    %149 = vector.shape_cast %148 : vector<1x16x16xf32> to vector<16x16xf32>
    %150 = arith.subf %149, %125 : vector<16x16xf32>
    %151 = math.exp %150 : vector<16x16xf32>
    %152 = arith.addf %142, %151 : vector<16x16xf32>
    %c2_i32_43 = arith.constant 2 : i32
    %153 = vector.broadcast %c2_i32_43 : i32 to vector<16x16xi32>
    %154 = arith.cmpi eq, %117, %153 : vector<16x16xi32>
    %155 = vector.extract_strided_slice %115 {offsets = [2, 0, 0], sizes = [1, 16, 16], strides = [1, 1, 1]} : vector<3x16x16xf32> to vector<1x16x16xf32>
    %156 = vector.shape_cast %155 : vector<1x16x16xf32> to vector<16x16xf32>
    %157 = arith.select %154, %156, %147 : vector<16x16xi1>, vector<16x16xf32>
    %158 = math.log %152 : vector<16x16xf32>
    %159 = arith.addf %158, %125 : vector<16x16xf32>
    %160 = arith.subf %159, %157 : vector<16x16xf32>
    %cst_44 = arith.constant 0.699999988 : f32
    %161 = vector.broadcast %cst_44 : f32 to vector<16x16xf32>
    %162 = arith.mulf %161, %160 : vector<16x16xf32>
    %163 = arith.addf %113, %162 : vector<16x16xf32>
    %164 = vector.shape_cast %163 : vector<16x16xf32> to vector<1x16x16xf32>
    %cst_45 = arith.constant dense<0.000000e+00> : vector<1xf32>
    %165 = vector.multi_reduction <add>, %164, %cst_45 [1, 2] : vector<1x16x16xf32> to vector<1xf32>
    %166 = vector.shape_cast %165 : vector<1xf32> to vector<1x1x1xf32>
    %167 = vector.extract %166[0, 0, 0] : f32 from vector<1x1x1xf32>
    %168 = vector.broadcast %167 : f32 to vector<1x1x1x1xf32>
    %c0_46 = arith.constant 0 : index
    %c0_47 = arith.constant 0 : index
    %c0_48 = arith.constant 0 : index
    %c0_49 = arith.constant 0 : index
    %169 = vector.load %arg11[%c0_46, %c0_47, %c0_48, %c0_49] : memref<1x1x1x1xf32, #tpu.memory_space<vmem>>, vector<1x1x1x1xf32>
    tpu.vector_store %arg11[%c0_46, %c0_47, %c0_48, %c0_49], %168 {strides = array<i32>} : memref<1x1x1x1xf32, #tpu.memory_space<vmem>>, vector<1x1x1x1xf32>,
    return
  }
  func.func @transform_0(%arg0: i32, %arg1: i32) -> (i32, i32, i32, i32) {
    %c0_i32 = arith.constant 0 : i32
    %c0_i32_0 = arith.constant 0 : i32
    %c0_i32_1 = arith.constant 0 : i32
    return %arg0, %c0_i32, %arg1, %c0_i32_0 : i32, i32, i32, i32
  }
  func.func @transform_1(%arg0: i32, %arg1: i32) -> (i32, i32, i32) {
    %c0_i32 = arith.constant 0 : i32
    %c0_i32_0 = arith.constant 0 : i32
    return %arg0, %arg1, %c0_i32 : i32, i32, i32
  }
  func.func @transform_2(%arg0: i32, %arg1: i32) -> (i32, i32, i32, i32) {
    %c0_i32 = arith.constant 0 : i32
    %c0_i32_0 = arith.constant 0 : i32
    %c0_i32_1 = arith.constant 0 : i32
    return %arg0, %c0_i32, %arg1, %c0_i32_0 : i32, i32, i32, i32
  }
  func.func @transform_3(%arg0: i32, %arg1: i32) -> (i32, i32, i32) {
    %c0_i32 = arith.constant 0 : i32
    %c0_i32_0 = arith.constant 0 : i32
    return %arg0, %arg1, %c0_i32 : i32, i32, i32
  }
  func.func @transform_4(%arg0: i32, %arg1: i32) -> (i32, i32, i32, i32) {
    %c0_i32 = arith.constant 0 : i32
    %c0_i32_0 = arith.constant 0 : i32
    %c0_i32_1 = arith.constant 0 : i32
    return %arg0, %c0_i32, %arg1, %c0_i32_0 : i32, i32, i32, i32
  }
  func.func @transform_5(%arg0: i32, %arg1: i32) -> (i32, i32, i32) {
    %c0_i32 = arith.constant 0 : i32
    %c0_i32_0 = arith.constant 0 : i32
    return %arg0, %arg1, %c0_i32 : i32, i32, i32
  }
  func.func @transform_6(%arg0: i32, %arg1: i32) -> (i32, i32, i32, i32) {
    %c0_i32 = arith.constant 0 : i32
    %c0_i32_0 = arith.constant 0 : i32
    %c0_i32_1 = arith.constant 0 : i32
    return %arg0, %c0_i32, %arg1, %c0_i32_0 : i32, i32, i32, i32
  }
  func.func @transform_7(%arg0: i32, %arg1: i32) -> (i32, i32, i32) {
    %c0_i32 = arith.constant 0 : i32
    %c0_i32_0 = arith.constant 0 : i32
    return %arg0, %arg1, %c0_i32 : i32, i32, i32
  }
  func.func @transform_8(%arg0: i32, %arg1: i32) -> (i32, i32, i32) {
    %c0_i32 = arith.constant 0 : i32
    %c0_i32_0 = arith.constant 0 : i32
    return %arg0, %arg1, %c0_i32 : i32, i32, i32
  }
  func.func @transform_9(%arg0: i32, %arg1: i32) -> (i32, i32, i32, i32) {
    %c0_i32 = arith.constant 0 : i32
    %c0_i32_0 = arith.constant 0 : i32
    %c0_i32_1 = arith.constant 0 : i32
    return %arg0, %arg1, %c0_i32, %c0_i32_0 : i32, i32, i32, i32
  }
}

</mosaic_0001>

<bundles_post_ra>
// kernel: tpu_custom_call.1
= control target key start
LH: loop header
LB: loop body
LE: loop exit
PB: predicated region body
PF: predicated region fallthrough
CT: control target
= control target key end

     0   :  { %s2454_s0 = inlined_call_operand.hbm [shape: f32[2,2,16,16], index: 0, kind: input, shape index: {}]   ;;  %s2455_s1 = inlined_call_operand.hbm [shape: s32[2,16,16], index: 1, kind: input, shape index: {}]   ;;  %s2456_s2 = inlined_call_operand.hbm [shape: f32[2,4,16,16], index: 2, kind: input, shape index: {}]   ;;  %s2457_s3 = inlined_call_operand.hbm [shape: s32[2,16,16], index: 3, kind: input, shape index: {}]   ;;  %s2458_s4 = inlined_call_operand.hbm [shape: f32[2,1,16,16], index: 4, kind: input, shape index: {}]   ;;  %s2459_s5 = inlined_call_operand.hbm [shape: f32[2,16,16], index: 5, kind: input, shape index: {}]   ;;  %s2460_s6 = inlined_call_operand.hbm [shape: f32[2,3,16,16], index: 6, kind: input, shape index: {}]   ;;  %s2461_s7 = inlined_call_operand.hbm [shape: s32[2,16,16], index: 7, kind: input, shape index: {}]   ;;  %s2462_s8 = inlined_call_operand.hbm [shape: f32[2,16,16], index: 8, kind: input, shape index: {}]   ;;  %s2463_s9 = inlined_call_operand.vmem [shape: f32[2,1,1,1], index: 9, kind: output, shape index: {}]  }
   0x1   :  { %2476 = sst [smem:[#allocation25_spill]] %s2455_s1 }
   0x2   :  { %2477 = sst [smem:[#allocation26_spill]] %s2457_s3 }
   0x3   :  { %2478 = sst [smem:[#allocation27_spill]] %s2459_s5 }
   0x4   :  { %2479 = sst [smem:[#allocation28_spill]] %s2461_s7 }
   0x5   :  { %2480 = sst [smem:[#allocation29_spill]] %s2463_s9 }
   0x6   :  { %14 = vsyncpa [#allocation3], 0 }
   0x7   :  { %16 = vsyncpa [#allocation3 + $0x1], 0 }
   0x8   :  { %17 = vsyncpa [#allocation5], 0 }
   0x9   :  { %19 = vsyncpa [#allocation5 + $0x1], 0 }
   0xa   :  { %20 = vsyncpa [#allocation8], 0 }
   0xb   :  { %22 = vsyncpa [#allocation8 + $0x1], 0 }
   0xc   :  { %23 = vsyncpa [#allocation11], 0 }
   0xd   :  { %25 = vsyncpa [#allocation11 + $0x1], 0 }
   0xe   :  { %26 = vsyncpa [#allocation14], 0 }
   0xf   :  { %28 = vsyncpa [#allocation14 + $0x1], 0  ;;  %s1813_s30 = smov 0   ;;  %s1815_s10 = smov 0  }
  0x10   :  { %s1817_s11 = smov 0   ;;  %s1819_s12 = smov 0  }
  0x11   :  { %s1821_s13 = smov 0   ;;  %s1823_s14 = smov 0  }
  0x12 LB: > { %2481 = sst [smem:[#allocation21_spill]] %s1738_s11  ;;  %s2464_s15 = sadd.s32 4294967295, %s1750_s14   ;;  %s1750_s14 = sphi %s1823_s14, %s34_s14   ;;  %s1746_s13 = sphi %s1821_s13, %s2512_s13   ;;  %s1742_s12 = sphi %s1819_s12, %s2511_s12   ;;  %s1738_s11 = sphi %s1817_s11, %s2507_s11   ;;  %s1734_s10 = sphi %s1815_s10, %s2510_s10   ;;  %s1730_s30 = sphi %s1813_s30, %s2509_s30  }
  0x13   : > { %2482 = sst [smem:[#allocation22_spill]] %s1742_s12  ;;  %s46_s16 = sadd.s32 1, %s1746_s13 }
  0x14   : > { %p48_p0 = scmp.ge.s32.totalorder %s46_s16, 2  ;;  %s55_s17 = sadd.s32 1, %s1738_s11 }
  0x15   : > { %p62_p1 = scmp.ne.s32.totalorder %s1738_s11, %s1734_s10  ;;  %p63_p2 = scmp.eq.s32.totalorder %s1750_s14, 0 }
  0x16   : > { %s2514_s16 = smov (%p48_p0, %s46_s16), 0  ;;  %p68_p4 = scmp.ne.s32.totalorder %s1734_s10, %s1730_s30 }
  0x17   : > { %2483 = sst [smem:[#allocation23_spill]] %s2514_s16  ;;  %p64_p3 = por %p63_p2, %p62_p1 }
  0x18   : > { %s50_s18 = ssub.s32 %s1746_s13, %s2514_s16  ;;  %p69_p5 = scmp.eq.s32.totalorder %s2464_s15, 0 }
  0x19   : > { %p53_p6 = scmp.eq.s32.totalorder %s50_s18, 0  ;;  %p1311_p8 = scmp.lt.s32.totalorder %s1750_s14, 2 }
  0x1a   : > { %p1854_p7 = por %p69_p5, %p68_p4  ;;  %s1863_s21 = sand.u32 1, %s1738_s11  }
  0x1b   : > { %s1860_s20 = scalar_select %p53_p6, %s1738_s11, %s55_s17  }
  0x1c   : > { %s2484_s19 = scalar_select %p1854_p7, 1, 0 }
  0x1d   : > { %2485 = sst [smem:[#allocation24_spill]] %s1860_s20  ;;  %p1865_p9 = pnand %p1311_p8, %p64_p3 }
  0x1e   : > { %s1870_s23 = sand.u32 1, %s1750_s14   ;;  %s1873_s24 = sshll.u32 %s1863_s21, 4 }
  0x1f   : > { %s1876_s25 = sshll.u32 %s1746_s13, 8  ;;  %s2487_s1 = sld [smem:[#allocation25_spill]] }
  0x20   : > { %s371_s29 = scalar_lea.vmem [#allocation4], %s1873_s24  ;;  %p1893_p12 = pneg %p1865_p9 }
  0x21   : > { %s380_s30 = sshll.u32 %s371_s29, 4  ;;  %s1885_s30 = int_to_ptr.vmem [resolvable:$true] %s380_s30 }
  0x25   : > { %s1882_s28 = scalar_lea.hbm %s2487_s1, %s1876_s25  ;;  %s1419_s16 = scalar_lea.hbm %s2487_s1, 512 }
  0x26   : > { %s1414_s18 = scalar_lea.hbm %s1882_s28, 256  ;;  %p1420_p1 = scmp.lt.u32.totalorder %s1882_s28, %s2487_s1 }
  0x27   : > { %p1415_p11 = scmp.ne.s32.totalorder %s1882_s28, %s1414_s18  ;;  %p1421_p2 = scmp.lt.u32.totalorder %s1419_s16, %s1414_s18 }
  0x28   : > { %p1423_p4 = scmp.lt.u32.totalorder %s1414_s18, %s1882_s28 }
  0x29   : > { %p1417_p13 = pnand %p1893_p12, %p1415_p11  ;;  %p1422_p3 = por %p1421_p2, %p1420_p1 }
  0x2b   : > { %p1418_p0 = pneg %p1417_p13  ;;  %p1424_p5 = por %p1423_p4, %p1422_p3 }
  0x2d   : > { %p1425_p6 = pnand %p1424_p5, %p1418_p0 }
  0x2f   : > { %1428 = shalt.err (!%p1425_p6)
}
  0x30   : > { %s1429_s17 = scalar_lea.vmem %s1885_s30, 256  ;;  %s1752_s26 = smov [#allocation4]  }
  0x31   : > { %p1430_p8 = scmp.ne.s32.totalorder %s1885_s30, %s1429_s17  ;;  %s1434_s27 = sshll.u32 %s1752_s26, 4  ;;  %s1435_s27 = int_to_ptr.vmem [resolvable:$false] %s1434_s27 }
  0x32   : > { %s1436_s20 = scalar_lea.vmem %s1435_s27, 512  ;;  %p1437_p10 = scmp.lt.s32.totalorder %s1885_s30, %s1435_s27 }
  0x33   : > { %p1432_p11 = pnand %p1430_p8, %p1893_p12  ;;  %p1438_p7 = scmp.lt.s32.totalorder %s1436_s20, %s1429_s17 }
  0x35   : > { %p1433_p13 = pneg %p1432_p11  ;;  %p1439_p1 = por %p1438_p7, %p1437_p10 }
  0x37   : > { %p1440_p2 = pnand %p1439_p1, %p1433_p13 }
  0x39   : > { %1443 = shalt.err (!%p1440_p2)
}
  0x3a   : > { %s2468_s16 = smov 128   ;;  %s2470_s18 = smov 8  }
  0x3b   : > { %s2489_s17 = scalar_lea.sflag [#allocation5], %s1870_s23  ;;  %p549_p7 = scmp.lt.s32.totalorder %s1750_s14, 3 }
  0x3c   : > { %1289 = dma.hbm_to_vmem [thread:$0]  (!%p1865_p9), %s1882_s28, 256, %s1885_s30, %s2489_s17, %s2468_s16, %s2468_s16, %s2470_s18  }
  0x3d   : > { %s2490_s3 = sld [smem:[#allocation26_spill]]  ;;  %p2491_p10 = scmp.ge.s32.totalorder %s1750_s14, 1 }
  0x3e   : > { %s417_s1 = scalar_lea.vmem [#allocation7], %s1873_s24  ;;  %s2472_s28 = scalar_lea.sflag [#allocation8], %s1870_s23 }
  0x3f   : > { %p1930_p0 = pnand %p2491_p10, %p549_p7  ;;  %s426_s11 = sshll.u32 %s417_s1, 4  ;;  %s1935_s11 = int_to_ptr.vmem [resolvable:$true] %s426_s11 }
  0x41   : > { %s2492_s20 = scalar_select %p1930_p0, 1, 0 }
  0x43   : > { %s1926_s27 = scalar_lea.hbm %s2490_s3, %s1876_s25  ;;  %s1449_s26 = scalar_lea.hbm %s2490_s3, 512 }
  0x44   : > { %s1444_s30 = scalar_lea.hbm %s1926_s27, 256  ;;  %p1450_p6 = scmp.lt.u32.totalorder %s1926_s27, %s2490_s3 }
  0x45   : > { %p1445_p3 = scmp.ne.s32.totalorder %s1926_s27, %s1444_s30  ;;  %p1451_p8 = scmp.lt.u32.totalorder %s1449_s26, %s1444_s30 }
  0x46   : > { %p1453_p13 = scmp.lt.u32.totalorder %s1444_s30, %s1926_s27 }
  0x47   : > { %p1447_p4 = pnand %p1445_p3, %p1893_p12  ;;  %p1452_p11 = por %p1451_p8, %p1450_p6 }
  0x49   : > { %p1448_p5 = pneg %p1447_p4  ;;  %p1454_p1 = por %p1453_p13, %p1452_p11 }
  0x4b   : > { %p1455_p2 = pnand %p1454_p1, %p1448_p5 }
  0x4d   : > { %1458 = shalt.err (!%p1455_p2)
}
  0x4e   : > { %s1459_s1 = scalar_lea.vmem %s1935_s11, 256  ;;  %s1755_s17 = smov [#allocation7]  }
  0x4f   : > { %p1460_p7 = scmp.ne.s32.totalorder %s1935_s11, %s1459_s1  ;;  %s1464_s29 = sshll.u32 %s1755_s17, 4  ;;  %s1465_s29 = int_to_ptr.vmem [resolvable:$false] %s1464_s29 }
  0x50   : > { %s1466_s16 = scalar_lea.vmem %s1465_s29, 512  ;;  %p1467_p4 = scmp.lt.s32.totalorder %s1935_s11, %s1465_s29 }
  0x51   : > { %p1462_p10 = pnand %p1460_p7, %p1893_p12  ;;  %p1468_p0 = scmp.lt.s32.totalorder %s1466_s16, %s1459_s1 }
  0x53   : > { %p1463_p3 = pneg %p1462_p10  ;;  %p1469_p6 = por %p1468_p0, %p1467_p4 }
  0x55   : > { %p1470_p8 = pnand %p1469_p6, %p1463_p3 }
  0x57   : > { %1473 = shalt.err (!%p1470_p8)
}
  0x58   : > { %s2493_s18 = smov 8   ;;  %s2494_s30 = smov 128  }
  0x59   : > { %1295 = dma.hbm_to_vmem [thread:$0]  (!%p1865_p9), %s1926_s27, 256, %s1935_s11, %s2472_s28, %s2494_s30, %s2494_s30, %s2493_s18  }
  0x5a   : > { %s2495_s5 = sld [smem:[#allocation27_spill]]  ;;  %s463_s29 = scalar_lea.vmem [#allocation10], %s1873_s24 }
  0x5b   : > { %s472_s16 = sshll.u32 %s463_s29, 4  ;;  %s2473_s3 = scalar_lea.sflag [#allocation11], %s1870_s23  ;;  %s1971_s16 = int_to_ptr.vmem [resolvable:$true] %s472_s16 }
  0x60   : > { %s1968_s1 = scalar_lea.hbm %s2495_s5, %s1876_s25  ;;  %s1479_s26 = scalar_lea.hbm %s2495_s5, 512 }
  0x61   : > { %s1474_s9 = scalar_lea.hbm %s1968_s1, 256  ;;  %p1480_p13 = scmp.lt.u32.totalorder %s1968_s1, %s2495_s5 }
  0x62   : > { %p1475_p0 = scmp.ne.s32.totalorder %s1968_s1, %s1474_s9  ;;  %p1481_p1 = scmp.lt.u32.totalorder %s1479_s26, %s1474_s9 }
  0x63   : > { %p1483_p7 = scmp.lt.u32.totalorder %s1474_s9, %s1968_s1 }
  0x64   : > { %p1477_p5 = pnand %p1475_p0, %p1893_p12  ;;  %p1482_p2 = por %p1481_p1, %p1480_p13 }
  0x66   : > { %p1478_p11 = pneg %p1477_p5  ;;  %p1484_p10 = por %p1483_p7, %p1482_p2 }
  0x68   : > { %p1485_p3 = pnand %p1484_p10, %p1478_p11 }
  0x6a   : > { %1488 = shalt.err (!%p1485_p3)
}
  0x6b   : > { %s1489_s29 = scalar_lea.vmem %s1971_s16, 256  ;;  %s1756_s11 = smov [#allocation10]  }
  0x6c   : > { %p1490_p4 = scmp.ne.s32.totalorder %s1971_s16, %s1489_s29  ;;  %s1494_s27 = sshll.u32 %s1756_s11, 4  ;;  %s1495_s27 = int_to_ptr.vmem [resolvable:$false] %s1494_s27 }
  0x6d   : > { %s1496_s28 = scalar_lea.vmem %s1495_s27, 512  ;;  %p1497_p0 = scmp.lt.s32.totalorder %s1971_s16, %s1495_s27 }
  0x6e   : > { %p1492_p6 = pnand %p1490_p4, %p1893_p12  ;;  %p1498_p5 = scmp.lt.s32.totalorder %s1496_s28, %s1489_s29 }
  0x70   : > { %p1493_p8 = pneg %p1492_p6  ;;  %p1499_p13 = por %p1498_p5, %p1497_p0 }
  0x72   : > { %p1500_p1 = pnand %p1499_p13, %p1493_p8 }
  0x74   : > { %1503 = shalt.err (!%p1500_p1)
}
  0x75   : > { %1301 = dma.hbm_to_vmem [thread:$0]  (!%p1865_p9), %s1968_s1, 256, %s1971_s16, %s2473_s3, %s2494_s30, %s2494_s30, %s2493_s18  }
  0x76   : > { %s2496_s7 = sld [smem:[#allocation28_spill]]  ;;  %s509_s29 = scalar_lea.vmem [#allocation13], %s1873_s24 }
  0x77   : > { %s518_s11 = sshll.u32 %s509_s29, 4  ;;  %s2475_s27 = scalar_lea.sflag [#allocation14], %s1870_s23  ;;  %s2007_s11 = int_to_ptr.vmem [resolvable:$true] %s518_s11 }
  0x7c   : > { %s2004_s17 = scalar_lea.hbm %s2496_s7, %s1876_s25  ;;  %s1509_s9 = scalar_lea.hbm %s2496_s7, 512 }
  0x7d   : > { %s1504_s28 = scalar_lea.hbm %s2004_s17, 256  ;;  %p1510_p10 = scmp.lt.u32.totalorder %s2004_s17, %s2496_s7 }
  0x7e   : > { %p1505_p11 = scmp.ne.s32.totalorder %s2004_s17, %s1504_s28  ;;  %p1511_p3 = scmp.lt.u32.totalorder %s1509_s9, %s1504_s28 }
  0x7f   : > { %p1513_p6 = scmp.lt.u32.totalorder %s1504_s28, %s2004_s17 }
  0x80   : > { %p1507_p2 = pnand %p1505_p11, %p1893_p12  ;;  %p1512_p4 = por %p1511_p3, %p1510_p10 }
  0x82   : > { %p1508_p7 = pneg %p1507_p2  ;;  %p1514_p8 = por %p1513_p6, %p1512_p4 }
  0x84   : > { %p1515_p0 = pnand %p1514_p8, %p1508_p7 }
  0x86   : > { %1518 = shalt.err (!%p1515_p0)
}
  0x87   : > { %s1519_s29 = scalar_lea.vmem %s2007_s11, 256  ;;  %s1757_s1 = smov [#allocation13]  }
  0x88   : > { %p1520_p5 = scmp.ne.s32.totalorder %s2007_s11, %s1519_s29  ;;  %s1524_s16 = sshll.u32 %s1757_s1, 4  ;;  %s1525_s16 = int_to_ptr.vmem [resolvable:$false] %s1524_s16 }
  0x89   : > { %s1526_s3 = scalar_lea.vmem %s1525_s16, 512  ;;  %p1527_p11 = scmp.lt.s32.totalorder %s2007_s11, %s1525_s16 }
  0x8a   : > { %p1522_p13 = pnand %p1520_p5, %p1893_p12  ;;  %p1528_p2 = scmp.lt.s32.totalorder %s1526_s3, %s1519_s29 }
  0x8c   : > { %p1523_p1 = pneg %p1522_p13  ;;  %p1529_p10 = por %p1528_p2, %p1527_p11 }
  0x8e   : > { %p1530_p3 = pnand %p1529_p10, %p1523_p1 }
  0x90   : > { %1533 = shalt.err (!%p1530_p3)
}
  0x91   : > { %1307 = dma.hbm_to_vmem [thread:$0]  (!%p1865_p9), %s2004_s17, 256, %s2007_s11, %s2475_s27, %s2494_s30, %s2494_s30, %s2493_s18  }
  0x92   : > { %s1216_s28 = sshll.u32 %s1863_s21, 5  ;;  %s1252_s9 = sshll.u32 %s1746_s13, 9 }
  0x93   : > { %s2041_s1 = scalar_lea.hbm %s2454_s0, %s1252_s9  ;;  %s348_s16 = scalar_lea.vmem [#allocation2], %s1216_s28 }
  0x94   : > { %s357_s3 = sshll.u32 %s348_s16, 4  ;;  %s1222_s5 = sshll.u32 %s1863_s21, 6  ;;  %s2044_s3 = int_to_ptr.vmem [resolvable:$true] %s357_s3 }
  0x95   : > { %s345_s7 = scalar_lea.sflag [#allocation3], %s1863_s21  ;;  %s1534_s12 = scalar_lea.hbm %s2041_s1, 512 }
  0x96   : > { %p1535_p7 = scmp.ne.s32.totalorder %s2041_s1, %s1534_s12  ;;  %s1539_s9 = scalar_lea.hbm %s2454_s0, 1024 }
  0x97   : > { %p1540_p8 = scmp.lt.u32.totalorder %s2041_s1, %s2454_s0  ;;  %p1541_p0 = scmp.lt.u32.totalorder %s1539_s9, %s1534_s12 }
  0x98   : > { %p1537_p4 = pnand %p1535_p7, %p1893_p12  ;;  %p1543_p13 = scmp.lt.u32.totalorder %s1534_s12, %s2041_s1 }
  0x99   : > { %p1542_p5 = por %p1541_p0, %p1540_p8 }
  0x9a   : > { %p1538_p6 = pneg %p1537_p4 }
  0x9b   : > { %p1544_p1 = por %p1543_p13, %p1542_p5 }
  0x9d   : > { %p1545_p11 = pnand %p1544_p1, %p1538_p6 }
  0x9f   : > { %1548 = shalt.err (!%p1545_p11)
}
  0xa0   : > { %s1549_s28 = scalar_lea.vmem %s2044_s3, 512  ;;  %s1758_s16 = smov [#allocation2]  }
  0xa1   : > { %p1550_p2 = scmp.ne.s32.totalorder %s2044_s3, %s1549_s28  ;;  %s1554_s17 = sshll.u32 %s1758_s16, 4  ;;  %s1555_s17 = int_to_ptr.vmem [resolvable:$false] %s1554_s17 }
  0xa2   : > { %s1556_s11 = scalar_lea.vmem %s1555_s17, 1024  ;;  %p1557_p7 = scmp.lt.s32.totalorder %s2044_s3, %s1555_s17 }
  0xa3   : > { %p1552_p10 = pnand %p1550_p2, %p1893_p12  ;;  %p1558_p4 = scmp.lt.s32.totalorder %s1556_s11, %s1549_s28 }
  0xa5   : > { %p1553_p3 = pneg %p1552_p10  ;;  %p1559_p8 = por %p1558_p4, %p1557_p7 }
  0xa7   : > { %p1560_p0 = pnand %p1559_p8, %p1553_p3 }
  0xa9   : > { %1563 = shalt.err (!%p1560_p0)
}
  0xaa   : > { %1286 = dma.hbm_to_vmem [thread:$0]  (!%p1865_p9), %s2041_s1, 512, %s2044_s3, %s345_s7, %s2494_s30, %s2494_s30, %s2493_s18  }
  0xab   : > { %s1254_s12 = sshll.u32 %s1746_s13, 10  ;;  %s394_s9 = scalar_lea.vmem [#allocation6], %s1222_s5 }
  0xac   : > { %s403_s26 = sshll.u32 %s394_s9, 4  ;;  %s2079_s16 = scalar_lea.hbm %s2456_s2, %s1254_s12  ;;  %s2081_s26 = int_to_ptr.vmem [resolvable:$true] %s403_s26 }
  0xad   : > { %s1564_s17 = scalar_lea.hbm %s2079_s16, 1024  ;;  %s1569_s5 = scalar_lea.hbm %s2456_s2, 2048 }
  0xae   : > { %p1565_p6 = scmp.ne.s32.totalorder %s2079_s16, %s1564_s17  ;;  %p1570_p1 = scmp.lt.u32.totalorder %s2079_s16, %s2456_s2 }
  0xaf   : > { %p1571_p11 = scmp.lt.u32.totalorder %s1569_s5, %s1564_s17  ;;  %p1573_p10 = scmp.lt.u32.totalorder %s1564_s17, %s2079_s16 }
  0xb0   : > { %p1567_p5 = pnand %p1565_p6, %p1893_p12 }
  0xb1   : > { %p1572_p2 = por %p1571_p11, %p1570_p1 }
  0xb2   : > { %p1568_p13 = pneg %p1567_p5 }
  0xb3   : > { %p1574_p3 = por %p1573_p10, %p1572_p2 }
  0xb5   : > { %p1575_p7 = pnand %p1574_p3, %p1568_p13 }
  0xb7   : > { %1578 = shalt.err (!%p1575_p7)
}
  0xb8   : > { %s1579_s12 = scalar_lea.vmem %s2081_s26, 1024  ;;  %s1759_s9 = smov [#allocation6]  }
  0xb9   : > { %p1580_p4 = scmp.ne.s32.totalorder %s2081_s26, %s1579_s12  ;;  %s1584_s29 = sshll.u32 %s1759_s9, 4  ;;  %s1585_s29 = int_to_ptr.vmem [resolvable:$false] %s1584_s29 }
  0xba   : > { %s1586_s28 = scalar_lea.vmem %s1585_s29, 2048  ;;  %p1587_p6 = scmp.lt.s32.totalorder %s2081_s26, %s1585_s29 }
  0xbb   : > { %p1582_p8 = pnand %p1580_p4, %p1893_p12  ;;  %p1588_p5 = scmp.lt.s32.totalorder %s1586_s28, %s1579_s12 }
  0xbd   : > { %p1583_p0 = pneg %p1582_p8  ;;  %p1589_p1 = por %p1588_p5, %p1587_p6 }
  0xbf   : > { %p1590_p11 = pnand %p1589_p1, %p1583_p0 }
  0xc1   : > { %1593 = shalt.err (!%p1590_p11)
}
  0xc2   : > { %s2497_s17 = scalar_lea.sflag [#allocation5], %s1870_s23  ;;  %s2113_s5 = scalar_lea.hbm %s2458_s4, %s1876_s25 }
  0xc3   : > { %1292 = dma.hbm_to_vmem [thread:$0]  (!%p1865_p9), %s2079_s16, 1024, %s2081_s26, %s2497_s17, %s2494_s30, %s2494_s30, %s2493_s18  }
  0xc4   : > { %s440_s3 = scalar_lea.vmem [#allocation9], %s1873_s24  ;;  %s1260_s12 = smul.u32 48, %s1863_s21 }
  0xc5   : > { %s449_s11 = sshll.u32 %s440_s3, 4  ;;  %s1261_s9 = smul.u32 768, %s1746_s13  ;;  %s2117_s11 = int_to_ptr.vmem [resolvable:$true] %s449_s11 }
  0xc6   : > { %s1594_s29 = scalar_lea.hbm %s2113_s5, 256  ;;  %s1599_s28 = scalar_lea.hbm %s2458_s4, 512 }
  0xc7   : > { %p1595_p13 = scmp.ne.s32.totalorder %s2113_s5, %s1594_s29  ;;  %p1600_p3 = scmp.lt.u32.totalorder %s2113_s5, %s2458_s4 }
  0xc8   : > { %p1601_p7 = scmp.lt.u32.totalorder %s1599_s28, %s1594_s29  ;;  %p1603_p8 = scmp.lt.u32.totalorder %s1594_s29, %s2113_s5 }
  0xc9   : > { %p1597_p2 = pnand %p1595_p13, %p1893_p12 }
  0xca   : > { %p1602_p4 = por %p1601_p7, %p1600_p3 }
  0xcb   : > { %p1598_p10 = pneg %p1597_p2 }
  0xcc   : > { %p1604_p0 = por %p1603_p8, %p1602_p4 }
  0xce   : > { %p1605_p6 = pnand %p1604_p0, %p1598_p10 }
  0xd0   : > { %1608 = shalt.err (!%p1605_p6)
}
  0xd1   : > { %s1609_s1 = scalar_lea.vmem %s2117_s11, 256  ;;  %s1760_s3 = smov [#allocation9]  }
  0xd2   : > { %p1610_p5 = scmp.ne.s32.totalorder %s2117_s11, %s1609_s1  ;;  %s1614_s26 = sshll.u32 %s1760_s3, 4  ;;  %s1615_s26 = int_to_ptr.vmem [resolvable:$false] %s1614_s26 }
  0xd3   : > { %s1616_s16 = scalar_lea.vmem %s1615_s26, 512  ;;  %p1617_p13 = scmp.lt.s32.totalorder %s2117_s11, %s1615_s26 }
  0xd4   : > { %p1612_p1 = pnand %p1610_p5, %p1893_p12  ;;  %p1618_p2 = scmp.lt.s32.totalorder %s1616_s16, %s1609_s1 }
  0xd6   : > { %p1613_p11 = pneg %p1612_p1  ;;  %p1619_p3 = por %p1618_p2, %p1617_p13 }
  0xd8   : > { %p1620_p7 = pnand %p1619_p3, %p1613_p11 }
  0xda   : > { %1623 = shalt.err (!%p1620_p7)
}
  0xdb   : > { %s2498_s29 = scalar_lea.sflag [#allocation8], %s1870_s23  ;;  %s2151_s7 = scalar_lea.hbm %s2460_s6, %s1261_s9 }
  0xdc   : > { %1298 = dma.hbm_to_vmem [thread:$0]  (!%p1865_p9), %s2113_s5, 256, %s2117_s11, %s2498_s29, %s2494_s30, %s2494_s30, %s2493_s18  }
  0xdd   : > { %s486_s1 = scalar_lea.vmem [#allocation12], %s1260_s12  ;;  %s2161_s27 = scalar_lea.hbm %s2462_s8, %s1876_s25 }
  0xde   : > { %s495_s3 = sshll.u32 %s486_s1, 4  ;;  %s1624_s5 = scalar_lea.hbm %s2151_s7, 768  ;;  %s2155_s3 = int_to_ptr.vmem [resolvable:$true] %s495_s3 }
  0xdf   : > { %p1625_p10 = scmp.ne.s32.totalorder %s2151_s7, %s1624_s5  ;;  %s1629_s9 = scalar_lea.hbm %s2460_s6, 1536 }
  0xe0   : > { %p1630_p0 = scmp.lt.u32.totalorder %s2151_s7, %s2460_s6  ;;  %p1631_p6 = scmp.lt.u32.totalorder %s1629_s9, %s1624_s5 }
  0xe1   : > { %p1627_p4 = pnand %p1625_p10, %p1893_p12  ;;  %p1633_p1 = scmp.lt.u32.totalorder %s1624_s5, %s2151_s7 }
  0xe2   : > { %p1632_p5 = por %p1631_p6, %p1630_p0 }
  0xe3   : > { %p1628_p8 = pneg %p1627_p4 }
  0xe4   : > { %p1634_p11 = por %p1633_p1, %p1632_p5 }
  0xe6   : > { %p1635_p13 = pnand %p1634_p11, %p1628_p8 }
  0xe8   : > { %1638 = shalt.err (!%p1635_p13)
}
  0xe9   : > { %s1639_s25 = scalar_lea.vmem %s2155_s3, 768  ;;  %s1761_s12 = smov [#allocation12]  }
  0xea   : > { %p1640_p2 = scmp.ne.s32.totalorder %s2155_s3, %s1639_s25  ;;  %s1644_s17 = sshll.u32 %s1761_s12, 4  ;;  %s1645_s17 = int_to_ptr.vmem [resolvable:$false] %s1644_s17 }
  0xeb   : > { %s1646_s1 = scalar_lea.vmem %s1645_s17, 1536  ;;  %p1647_p10 = scmp.lt.s32.totalorder %s2155_s3, %s1645_s17 }
  0xec   : > { %p1642_p3 = pnand %p1640_p2, %p1893_p12  ;;  %p1648_p4 = scmp.lt.s32.totalorder %s1646_s1, %s1639_s25 }
  0xee   : > { %p1643_p7 = pneg %p1642_p3  ;;  %p1649_p0 = por %p1648_p4, %p1647_p10 }
  0xf0   : > { %p1650_p6 = pnand %p1649_p0, %p1643_p7 }
  0xf2   : > { %1653 = shalt.err (!%p1650_p6)
}
  0xf3   : > { %s2499_s26 = scalar_lea.sflag [#allocation11], %s1870_s23  ;;  %s532_s16 = scalar_lea.vmem [#allocation15], %s1873_s24 }
  0xf4   : > { %1304 = dma.hbm_to_vmem [thread:$0]  (!%p1865_p9), %s2151_s7, 768, %s2155_s3, %s2499_s26, %s2494_s30, %s2494_s30, %s2493_s18  }
  0xf5   : > { %s541_s5 = sshll.u32 %s532_s16, 4  ;;  %s1654_s11 = scalar_lea.hbm %s2161_s27, 256  ;;  %s2190_s5 = int_to_ptr.vmem [resolvable:$true] %s541_s5 }
  0xf6   : > { %p1655_p8 = scmp.ne.s32.totalorder %s2161_s27, %s1654_s11  ;;  %s1659_s29 = scalar_lea.hbm %s2462_s8, 512 }
  0xf7   : > { %p1660_p11 = scmp.lt.u32.totalorder %s2161_s27, %s2462_s8  ;;  %p1661_p13 = scmp.lt.u32.totalorder %s1659_s29, %s1654_s11 }
  0xf8   : > { %p1657_p5 = pnand %p1655_p8, %p1893_p12  ;;  %p1663_p3 = scmp.lt.u32.totalorder %s1654_s11, %s2161_s27 }
  0xf9   : > { %p1662_p2 = por %p1661_p13, %p1660_p11 }
  0xfa   : > { %p1658_p1 = pneg %p1657_p5 }
  0xfb   : > { %p1664_p7 = por %p1663_p3, %p1662_p2 }
  0xfd   : > { %p1665_p10 = pnand %p1664_p7, %p1658_p1 }
  0xff   : > { %1668 = shalt.err (!%p1665_p10)
}
 0x100   : > { %s1669_s24 = scalar_lea.vmem %s2190_s5, 256  ;;  %s1762_s7 = smov [#allocation15]  }
 0x101   : > { %p1670_p4 = scmp.ne.s32.totalorder %s2190_s5, %s1669_s24  ;;  %s1674_s3 = sshll.u32 %s1762_s7, 4  ;;  %s1675_s3 = int_to_ptr.vmem [resolvable:$false] %s1674_s3 }
 0x102   : > { %s1676_s12 = scalar_lea.vmem %s1675_s3, 512  ;;  %p1677_p8 = scmp.lt.s32.totalorder %s2190_s5, %s1675_s3 }
 0x103   : > { %p1672_p0 = pnand %p1670_p4, %p1893_p12  ;;  %p1678_p5 = scmp.lt.s32.totalorder %s1676_s12, %s1669_s24 }
 0x105   : > { %p1673_p6 = pneg %p1672_p0  ;;  %p1679_p11 = por %p1678_p5, %p1677_p8 }
 0x107   : > { %p1680_p13 = pnand %p1679_p11, %p1673_p6 }
 0x109   : > { %1683 = shalt.err (!%p1680_p13)
}
 0x10a   : > { %s2500_s17 = scalar_lea.sflag [#allocation14], %s1870_s23  ;;  %p2501_p12 = scmp.ne.s32.totalorder %s2492_s20, 0 }
 0x10b   : > { %1310 = dma.hbm_to_vmem [thread:$0]  (!%p1865_p9), %s2161_s27, 256, %s2190_s5, %s2500_s17, %s2494_s30, %s2494_s30, %s2493_s18  }
 0x10c   : > { %553 = sbr.rel (%p2501_p12) target bundleno = 562 (0x232), region = 56  ;;  %s555_s15 = sand.u32 (!%p2501_p12), 1, %s1734_s10  }
 0x10d   : > { %s1242_s1 = sshll.u32 (!%p2501_p12), %s555_s15, 5  ;;  %s556_s26 = scalar_lea.sflag (!%p2501_p12), [#allocation3], %s555_s15 }
 0x10e   : > { %s559_s16 = scalar_lea.vmem (!%p2501_p12), [#allocation2], %s1242_s1  ;;  %p2502_p1 = scmp.ne.s32.totalorder (!%p2501_p12), %s2484_s19, 0 }
 0x113   : > { %1709 = dma.done.wait (%p2502_p1), %s556_s26, 512  }
 0x114   : > { %1711 = vsyncadd (%p2502_p1), %s556_s26, 4294966784  ;;  %s2503_s22 = sadd.s32 4294967295, %s1750_s14   ;;  %s2227_s11 = sshll.u32 %s555_s15, 4 }
 0x115   : > { %s564_s23 = sand.u32 1, %s2503_s22   ;;  %s568_s18 = scalar_lea.vmem [#allocation4], %s2227_s11 }
 0x116   : > { %s565_s20 = scalar_lea.sflag [#allocation5], %s564_s23 }
 0x117   : > { %1713 = dma.done.wait (%p2502_p1), %s565_s20, 1280  }
 0x118   : > { %1715 = vsyncadd (%p2502_p1), %s565_s20, 4294966016  ;;  %s1244_s30 = sshll.u32 %s555_s15, 6  ;;  %s583_s5 = scalar_lea.sflag [#allocation8], %s564_s23 }
 0x119   : > { %s2234_s27 = scalar_lea.vmem [#allocation6], %s1244_s30  ;;  %s586_s21 = scalar_lea.vmem [#allocation7], %s2227_s11 }
 0x11a   : > { %1717 = dma.done.wait (%p2502_p1), %s583_s5, 512  }
 0x11b   : > { %1719 = vsyncadd (%p2502_p1), %s583_s5, 4294966784  ;;  %s595_s9 = scalar_lea.vmem [#allocation9], %s2227_s11  ;;  %s601_s29 = scalar_lea.sflag [#allocation11], %s564_s23 }
 0x11c   : > { %s604_s28 = scalar_lea.vmem [#allocation10], %s2227_s11 }
 0x11d   : > { %1721 = dma.done.wait (%p2502_p1), %s601_s29, 1024  }
 0x11e   : > { %1723 = vsyncadd (%p2502_p1), %s601_s29, 4294966272  ;;  %s1262_s25 = smul.u32 48, %s555_s15  ;;  %s619_s7 = scalar_lea.sflag [#allocation14], %s564_s23 }
 0x11f   : > { %s622_s3 = scalar_lea.vmem [#allocation13], %s2227_s11 }
 0x120   : > { %s2247_s24 = scalar_lea.vmem [#allocation12], %s1262_s25 }
 0x121   : > { %1725 = dma.done.wait (%p2502_p1), %s619_s7, 512  }
 0x122   : > { %1727 = vsyncadd (%p2502_p1), %s619_s7, 4294966784  ;;  %v2254_v0 = vld [vmem:[%s559_s16] sm:$0xff]  ;;  %v2256_v1 = vld [vmem:[%s559_s16 + $0x8] sm:$0xff]  ;;  %s631_s19 = scalar_lea.vmem [#allocation15], %s2227_s11  ;;  %s2504_s12 = sld [smem:[#allocation22_spill]] }
 0x123   : > { %v2258_v2 = vld [vmem:[%s559_s16 + $0x10] sm:$0xff]  ;;  %v2260_v3 = vld [vmem:[%s559_s16 + $0x18] sm:$0xff]  ;;  %v2271_v6 = vld [vmem:[%s2234_s27] sm:$0xff]  ;;  %s2505_s1 = sld [smem:[#allocation29_spill]] }
 0x124   : > { %v2264_v4 = vmax.f32 %v2254_v0, %v2258_v2  ;;  %v2268_v5 = vmax.f32 %v2256_v1, %v2260_v3  ;;  %v2274_v7 = vld [vmem:[%s2234_s27 + $0x10] sm:$0xff]  ;;  %v2281_v10 = vld [vmem:[%s2234_s27 + $0x8] sm:$0xff]  ;;  %v2284_v11 = vld [vmem:[%s2234_s27 + $0x18] sm:$0xff] }
 0x125   : > { %v2287_v12 = vld [vmem:[%s2234_s27 + $0x20] sm:$0xff]  ;;  %v2292_v16 = vld [vmem:[%s2234_s27 + $0x28] sm:$0xff]  ;;  %v772_v17 = vmax.f32 %v2271_v6, %v2274_v7  ;;  %v2299_v19 = vld [vmem:[%s2234_s27 + $0x30] sm:$0xff]  ;;  %v773_v20 = vmax.f32 %v2281_v10, %v2284_v11 }
 0x126   : > { %v730_v8 = vsub.f32 %v2254_v0, %v2264_v4  ;;  %v742_v9 = vsub.f32 %v2258_v2, %v2264_v4  ;;  %v731_v13 = vsub.f32 %v2256_v1, %v2268_v5  ;;  %v743_v18 = vsub.f32 %v2260_v3, %v2268_v5  ;;  %v2304_v21 = vld [vmem:[%s2234_s27 + $0x38] sm:$0xff]  ;;  %v2329_v40 = vld [vmem:[%s2247_s24] sm:$0xff]  ;;  %v2332_v41 = vld [vmem:[%s2247_s24 + $0x10] sm:$0xff] }
 0x127   : > { %v774_v22 = vmax.f32 %v772_v17, %v2287_v12  ;;  %v775_v23 = vmax.f32 %v773_v20, %v2292_v16  ;;  %v2337_v44 = vld [vmem:[%s2247_s24 + $0x8] sm:$0xff]  ;;  %v2340_v45 = vld [vmem:[%s2247_s24 + $0x18] sm:$0xff]  ;;  %v2343_v48 = vld [vmem:[%s2247_s24 + $0x20] sm:$0xff]  ;;  %v868_v50 = vmax.f32 %v2329_v40, %v2332_v41 }
 0x128   : > { %v732_v14 = vmul.f32 1.442695, %v730_v8  ;;  %v744_v15 = vmul.f32 1.442695, %v742_v9  ;;  %v734_v24 = vmul.f32 1.442695, %v731_v13  ;;  %v869_v52 = vmax.f32 %v2337_v44, %v2340_v45 }
 0x129   : > { %v2309_v25 = vmax.f32 %v774_v22, %v2299_v19  ;;  %v746_v26 = vmul.f32 1.442695, %v743_v18  ;;  %v2312_v27 = vmax.f32 %v775_v23, %v2304_v21  ;;  %v2346_v49 = vld [vmem:[%s2247_s24 + $0x28] sm:$0xff]  ;;  %v2353_v54 = vmax.f32 %v868_v50, %v2343_v48  ;;  %v726_v50 = vld [vmem:[%s568_s18] sm:$0xff]  ;;  %p716_p9 = scmp.lt.s32.totalorder %s2504_s12, 1 }
 0x12a   : > { %1362 = vpow2.f32 %v732_v14  ;;  %v2356_v55 = vmax.f32 %v869_v52, %v2346_v49  ;;  %vm738_vm4 = vcmp.eq.s32.totalorder %v726_v50, 0  ;;  %vm750_vm8 = vcmp.eq.s32.totalorder %v726_v50, 1 }
 0x12b   : > { %1364 = vpow2.f32 %v744_v15  ;;  %v778_v28 = vsub.f32 %v2271_v6, %v2309_v25  ;;  %v790_v29 = vsub.f32 %v2274_v7, %v2309_v25  ;;  %v802_v30 = vsub.f32 %v2287_v12, %v2309_v25  ;;  %s2516_s12 = smov (!%p716_p9, %s2504_s12), 1 }
 0x12c   : > { %v779_v31 = vsub.f32 %v2281_v10, %v2312_v27  ;;  %v791_v32 = vsub.f32 %v2284_v11, %v2312_v27  ;;  %v803_v33 = vsub.f32 %v2292_v16, %v2312_v27  ;;  %1366 = vpow2.f32 %v734_v24  ;;  %s721_s26 = scalar_lea.vmem %s2505_s1, %s2516_s12 }
 0x12d   : > { %v780_v34 = vmul.f32 1.442695, %v778_v28  ;;  %v792_v35 = vmul.f32 1.442695, %v790_v29  ;;  %1368 = vpow2.f32 %v746_v26  ;;  %v814_v38 = vsub.f32 %v2299_v19, %v2309_v25 }
 0x12e   : > { %v782_v36 = vmul.f32 1.442695, %v779_v31  ;;  %v794_v37 = vmul.f32 1.442695, %v791_v32  ;;  %v804_v39 = vmul.f32 1.442695, %v802_v30  ;;  %v815_v43 = vsub.f32 %v2304_v21, %v2312_v27 }
 0x12f   : > { %1370 = vpow2.f32 %v780_v34  ;;  %v806_v42 = vmul.f32 1.442695, %v803_v33  ;;  %v816_v46 = vmul.f32 1.442695, %v814_v38  ;;  %v872_v58 = vsub.f32 %v2329_v40, %v2353_v54  ;;  %v2372_v34 = vld [vmem:[%s586_s21] sm:$0xff] }
 0x130   : > { %1372 = vpow2.f32 %v782_v36  ;;  %v818_v53 = vmul.f32 1.442695, %v815_v43  ;;  %v873_v59 = vsub.f32 %v2337_v44, %v2356_v55  ;;  %v884_v61 = vsub.f32 %v2332_v41, %v2353_v54  ;;  %v2376_v36 = vld [vmem:[%s586_s21 + $0x8] sm:$0xff]  ;;  %v838_v38 = vld [vmem:[%s631_s19] sm:$0xff] }
 0x131   : > { %1374 = vpow2.f32 %v792_v35  ;;  %v874_v63 = vmul.f32 1.442695, %v872_v58  ;;  %v885_v9 = vsub.f32 %v2340_v45, %v2356_v55  ;;  %v896_v23 = vsub.f32 %v2343_v48, %v2353_v54 }
 0x132   : > { %1376 = vpow2.f32 %v794_v37  ;;  %v876_v8 = vmul.f32 1.442695, %v873_v59  ;;  %v886_v14 = vmul.f32 1.442695, %v884_v61  ;;  %v897_v24 = vsub.f32 %v2346_v49, %v2356_v55 }
 0x133   : > { %1378 = vpow2.f32 %v804_v39  ;;  %v888_v18 = vmul.f32 1.442695, %v885_v9  ;;  %v898_v31 = vmul.f32 1.442695, %v896_v23  ;;  %v839_v39 = vld [vmem:[%s631_s19 + $0x8] sm:$0xff]  ;;  %vm786_vm0 = vcmp.eq.s32.totalorder %v2372_v34, 0 }
 0x134   : > { %v1363_v47 = vpop.eup %1362  ;;  %1380 = vpow2.f32 %v806_v42  ;;  %v900_v32 = vmul.f32 1.442695, %v897_v24  ;;  %vm787_vm1 = vcmp.eq.s32.totalorder %v2376_v36, 0  ;;  %v841_v52 = vmul.f32 0.09531018, %v839_v39 }
 0x135   : > { %v1365_v51 = vpop.eup %1364  ;;  %1382 = vpow2.f32 %v816_v46  ;;  %v840_v46 = vmul.f32 0.09531018, %v838_v38  ;;  %vm798_vm2 = vcmp.eq.s32.totalorder %v2372_v34, 1  ;;  %v789_v58 = vsel %vm787_vm1, %v2281_v10, 0.0 }
 0x136   : > { %v748_v56 = vadd.f32 %v1365_v51, %v1363_v47  ;;  %v1367_v57 = vpop.eup %1366  ;;  %1384 = vpow2.f32 %v818_v53  ;;  %v727_v51 = vld [vmem:[%s568_s18 + $0x8] sm:$0xff]  ;;  %vm799_vm3 = vcmp.eq.s32.totalorder %v2376_v36, 1  ;;  %vm810_vm6 = vcmp.eq.s32.totalorder %v2372_v34, 2 }
 0x137   : > { %v1369_v60 = vpop.eup %1368  ;;  %vm739_vm5 = vcmp.eq.s32.totalorder %v727_v51, 0  ;;  %vm811_vm7 = vcmp.eq.s32.totalorder %v2376_v36, 2  ;;  %vm751_vm9 = vcmp.eq.s32.totalorder %v727_v51, 1  ;;  %vm822_vm10 = vcmp.eq.s32.totalorder %v2372_v34, 3 }
 0x138   : > { %1386 = vlog2.f32 %v748_v56  ;;  %v749_v17 = vadd.f32 %v1369_v60, %v1367_v57  ;;  %v788_v56 = vsel %vm786_vm0, %v2271_v6, 0.0  ;;  %v842_v60 = vmul.f32 1.442695, %v840_v46 }
 0x139   : > { %v1371_v62 = vpop.eup %1370  ;;  %1388 = vpow2.f32 %v874_v63  ;;  %v844_v63 = vmul.f32 1.442695, %v841_v52  ;;  %vm823_vm11 = vcmp.eq.s32.totalorder %v2376_v36, 3 }
 0x13a   : > { %v1373_v13 = vpop.eup %1372  ;;  %1390 = vpow2.f32 %v876_v8 }
 0x13b   : > { %v1375_v15 = vpop.eup %1374  ;;  %1392 = vpow2.f32 %v886_v14 }
 0x13c   : > { %v1377_v20 = vpop.eup %1376  ;;  %v796_v22 = vadd.f32 %v1375_v15, %v1371_v62  ;;  %1394 = vpow2.f32 %v888_v18  ;;  %v800_v62 = vsel %vm798_vm2, %v2274_v7, %v788_v56  ;;  %v740_v15 = vsel %vm738_vm4, %v2254_v0, 0.0  ;;  %v848_v0 = vld [vmem:[%s595_s9] sm:$0xff] }
 0x13d   : > { %v1379_v26 = vpop.eup %1378  ;;  %v797_v28 = vadd.f32 %v1377_v20, %v1373_v13  ;;  %1396 = vlog2.f32 %v749_v17  ;;  %v801_v13 = vsel %vm799_vm3, %v2284_v11, %v789_v58  ;;  %v741_v17 = vsel %vm739_vm5, %v2256_v1, 0.0  ;;  %v850_v1 = vld [vmem:[%s604_s28] sm:$0xff] }
 0x13e   : > { %v1381_v29 = vpop.eup %1380  ;;  %v808_v30 = vadd.f32 %v1379_v26, %v796_v22  ;;  %1398 = vpow2.f32 %v898_v31  ;;  %v812_v18 = vsel %vm810_vm6, %v2287_v12, %v800_v62  ;;  %v813_v23 = vsel %vm811_vm7, %v2292_v16, %v801_v13  ;;  %v851_v31 = vld [vmem:[%s604_s28 + $0x8] sm:$0xff] }
 0x13f   : > { %v1383_v33 = vpop.eup %1382  ;;  %v809_v35 = vadd.f32 %v1381_v29, %v797_v28  ;;  %1400 = vpow2.f32 %v900_v32  ;;  %v866_v28 = vld [vmem:[%s622_s3] sm:$0xff]  ;;  %v752_v29 = vsel %vm750_vm8, %v2258_v2, %v740_v15  ;;  %v824_v16 = vsel %vm822_vm10, %v2299_v19, %v812_v18  ;;  %v867_v32 = vld [vmem:[%s622_s3 + $0x8] sm:$0xff] }
 0x140   : > { %v820_v37 = vadd.f32 %v1383_v33, %v808_v30  ;;  %v1385_v42 = vpop.eup %1384  ;;  %v849_v30 = vld [vmem:[%s595_s9 + $0x8] sm:$0xff]  ;;  %v753_v33 = vsel %vm751_vm9, %v2260_v3, %v741_v17  ;;  %v852_v36 = vsub.f32 %v848_v0, %v850_v1  ;;  %vm880_vm12 = vcmp.eq.s32.totalorder %v866_v28, 0 }
 0x141   : > { %v821_v43 = vadd.f32 %v1385_v42, %v809_v35  ;;  %v853_v39 = vsub.f32 %v849_v30, %v851_v31  ;;  %vm881_vm13 = vcmp.eq.s32.totalorder %v867_v32, 0  ;;  %vm892_vm14 = vcmp.eq.s32.totalorder %v866_v28, 1 }
 0x142   : > { %1402 = vlog2.f32 %v820_v37  ;;  %v1387_v47 = vpop.eup %1386  ;;  %v825_v37 = vsel %vm823_vm11, %v2304_v21, %v813_v23  ;;  %v854_v46 = vmul.f32 %v852_v36, %v852_v36  ;;  %v883_v50 = vsel %vm881_vm13, %v2337_v44, 0.0 }
 0x143   : > { %v1389_v53 = vpop.eup %1388  ;;  %1404 = vlog2.f32 %v821_v43  ;;  %v755_v9 = vmul.f32 0.6931472, %v1387_v47  ;;  %v882_v47 = vsel %vm880_vm12, %v2329_v40, 0.0  ;;  %vm893_vm15 = vcmp.eq.s32.totalorder %v867_v32, 1 }
 0x144   : > { %v1391_v57 = vpop.eup %1390  ;;  %1406 = vpow2.f32 %v842_v60  ;;  %v855_v51 = vmul.f32 %v853_v39, %v853_v39  ;;  %v894_v56 = vsel %vm892_vm14, %v2332_v41, %v882_v47  ;;  %vm904_vm0 = vcmp.eq.s32.totalorder %v866_v28, 2 }
 0x145   : > { %v1393_v59 = vpop.eup %1392  ;;  %1408 = vpow2.f32 %v844_v63  ;;  %v758_v26 = vadd.f32 %v755_v9, %v2264_v4  ;;  %vm905_vm1 = vcmp.eq.s32.totalorder %v867_v32, 2  ;;  %v856_v60 = vmul.f32 0.5, %v854_v46 }
 0x146   : > { %v1395_v61 = vpop.eup %1394  ;;  %v890_v8 = vadd.f32 %v1393_v59, %v1389_v53  ;;  %v857_v62 = vmul.f32 0.5, %v855_v51  ;;  %v906_v44 = vsel %vm904_vm0, %v2343_v48, %v894_v56  ;;  %vm920_vm2 = vcmask 130048  }
 0x147   : > { %v1397_v6 = vpop.eup %1396  ;;  %v891_v10 = vadd.f32 %v1395_v61, %v1391_v57  ;;  %v760_v19 = vsub.f32 %v758_v26, %v752_v29  ;;  %vm934_vm3 = vcmask 0  }
 0x148   : > { %v1399_v14 = vpop.eup %1398  ;;  %v757_v22 = vmul.f32 0.6931472, %v1397_v6 }
 0x149   : > { %v1401_v7 = vpop.eup %1400  ;;  %v902_v11 = vadd.f32 %v1399_v14, %v890_v8 }
 0x14a   : > { %v903_v24 = vadd.f32 %v1401_v7, %v891_v10  ;;  %v759_v2 = vadd.f32 %v757_v22, %v2268_v5 }
 0x14b   : > { %1410 = vlog2.f32 %v902_v11 }
 0x14c   : > { %v1403_v20 = vpop.eup %1402  ;;  %1412 = vlog2.f32 %v903_v24  ;;  %v761_v3 = vsub.f32 %v759_v2, %v753_v33 }
 0x14d   : > { %v827_v12 = vmul.f32 0.6931472, %v1403_v20  ;;  %v1405_v4 = vpop.eup %1404 }
 0x14e   : > { %v829_v34 = vmul.f32 0.6931472, %v1405_v4  ;;  %v1407_v5 = vpop.eup %1406 }
 0x14f   : > { %v830_v35 = vadd.f32 %v827_v12, %v2309_v25  ;;  %v1409_v52 = vpop.eup %1408 }
 0x150   : > { %v831_v42 = vadd.f32 %v829_v34, %v2312_v27  ;;  %v895_v27 = vsel %vm893_vm15, %v2340_v45, %v883_v50 }
 0x151   : > { %v832_v38 = vsub.f32 %v830_v35, %v824_v16  ;;  %v907_v6 = vsel %vm905_vm1, %v2346_v49, %v895_v27 }
 0x152   : > { %v833_v25 = vsub.f32 %v831_v42, %v825_v37 }
 0x153   : > { %v834_v43 = vmul.f32 0.8, %v832_v38 }
 0x154   : > { %v835_v53 = vmul.f32 0.8, %v833_v25 }
 0x155   : > { %v836_v21 = vadd.f32 %v834_v43, %v760_v19  ;;  %v1411_v57 = vpop.eup %1410 }
 0x156   : > { %v1413_v58 = vpop.eup %1412  ;;  %v837_v40 = vadd.f32 %v835_v53, %v761_v3  ;;  %v909_v61 = vmul.f32 0.6931472, %v1411_v57 }
 0x157   : > { %v846_v59 = vmul.f32 %v1407_v5, %v836_v21  ;;  %v911_v63 = vmul.f32 0.6931472, %v1413_v58 }
 0x158   : > { %v847_v8 = vmul.f32 %v1409_v52, %v837_v40  ;;  %v912_v9 = vadd.f32 %v909_v61, %v2353_v54 }
 0x159   : > { %v913_v41 = vadd.f32 %v911_v63, %v2356_v55  ;;  %v858_v13 = vadd.f32 %v856_v60, %v846_v59 }
 0x15a   : > { %v914_v10 = vsub.f32 %v912_v9, %v906_v44  ;;  %v859_v45 = vadd.f32 %v857_v62, %v847_v8 }
 0x15b   : > { %v915_v14 = vsub.f32 %v913_v41, %v907_v6 }
 0x15c   : > { %v916_v15 = vmul.f32 0.7, %v914_v10 }
 0x15d   : > { %v917_v17 = vmul.f32 0.7, %v915_v14 }
 0x15e   : > { %v918_v7 = vadd.f32 %v916_v15, %v858_v13 }
 0x15f   : > { %v919_v18 = vadd.f32 %v917_v17, %v859_v45 }
 0x160   : > { %v921_v48 = vsel %vm920_vm2, %v918_v7, 0.0 }
 0x161   : > { %v922_v11 = vsel %vm920_vm2, %v919_v18, 0.0 }
 0x162   : > { %v923_v20 = vadd.f32 %v922_v11, %v921_v48 }
 0x164   : > { %924 = vadd.xlane.f32.xlu0 %v923_v20 }
 0x1f1   : > { %v925_v49 = vpop.xlane.xlu0 %924 }
 0x1f2   : > { %v926_v22 = vrot.slane %v925_v49, 4 }
 0x1f4   : > { %v927_v54 = vadd.f32 %v926_v22, %v925_v49 }
 0x1f6   : > { %v928_v23 = vrot.slane %v927_v54, 2 }
 0x1f8   : > { %v929_v55 = vadd.f32 %v928_v23, %v927_v54 }
 0x1fa   : > { %v930_v0 = vrot.slane %v929_v55, 1 }
 0x1fc   : > { %v931_v1 = vadd.f32 %v930_v0, %v929_v55 }
 0x1fe   : > { %1263 = vpush %v931_v1 }
 0x22f   : > { %s1264_s16 = spop %1263 }
 0x230   : > { %v933_v24 = vstv %s1264_s16 }
 0x231   : > { %935 = vst.msk [vmem:[%s721_s26] sm:$0x1] %vm934_vm3, %v933_v24 }
 0x232 PF: > { %s34_s14 = sadd.s32 1, %s1750_s14   ;;  %s2506_s22 = sld [smem:[#allocation21_spill]] }
 0x233   : > { %p31_p2 = scmp.ge.s32.totalorder %s34_s14, 4   ;;  %s2507_s11 = sld [smem:[#allocation24_spill]] }
 0x234   : > { %s2508_s23 = sld [smem:[#allocation23_spill]]  ;;  %s2509_s30 = smov %s1734_s10 }
 0x235   : > { %s2511_s12 = smov %s1746_s13  ;;  %33 = sbr.rel (!%p31_p2) target bundleno = 18 (0x12), region = 192 }
 0x238   : > { %s2510_s10 = smov %s2506_s22 }
 0x23a   : > { %s2512_s13 = smov %s2508_s23 }
 0x23c   :  { %959 = vsyncpa [#allocation3], 1 }
 0x23d   :  { %961 = vsyncpa [#allocation3 + $0x1], 1 }
 0x23e   :  { %962 = vsyncpa [#allocation5], 1 }
 0x23f   :  { %964 = vsyncpa [#allocation5 + $0x1], 1 }
 0x240   :  { %965 = vsyncpa [#allocation8], 1 }
 0x241   :  { %967 = vsyncpa [#allocation8 + $0x1], 1 }
 0x242   :  { %968 = vsyncpa [#allocation11], 1 }
 0x243   :  { %970 = vsyncpa [#allocation11 + $0x1], 1 }
 0x244   :  { %971 = vsyncpa [#allocation14], 1 }
 0x245   :  { %973 = vsyncpa [#allocation14 + $0x1], 1 }

</bundles_post_ra>
